<compile_context>
chip_gen: v5e
topology: v5e:2x2
jax: 0.10.0
libtpu: 0.0.40
codegen_flags: <defaults>
</compile_context>

<pallas_src>
import math
import functools

import jax
import jax.numpy as jnp
from jax.experimental import pallas as pl
from jax.experimental.pallas import tpu as pltpu


# -------------------------- Pallas kernel --------------------------

def _actor_critic_eval_kernel(
    state_ref,    # (BT, S)    f32
    action_ref,   # (BT, A)    f32
    w1_ref,       # (S, 128)   fused [wa1 | wc1]              (f32 or bf16)
    b1_ref,       # (1, 128)   f32
    w2_ref,       # (128, 64)  block-diag {wa2, wc2}          (f32 or bf16)
    b2_ref,       # (1, 64)    f32
    w3_ref,       # (64, 128)  block-diag-ish {wa3, wc3}      (f32 or bf16)
    b3_ref,       # (1, 128)   f32
    gauss_ref,    # (1, 128)   cols 0:A = 1/var, col A = k*log(2*pi)+logdet
    out_ref,      # (BT, 2)    col 0 = logprob, col 1 = value
):
    x = state_ref[...]                       # (BT, S)
    a = action_ref[...]                      # (BT, A)
    A = a.shape[-1]
    wdt = w1_ref.dtype                       # f32 (default) or bf16 (MXU fast path)

    # ---- fused actor+critic MLP: 3 full(ish)-width matmuls, f32 accumulation ----
    h1 = jnp.tanh(
        jnp.dot(x.astype(wdt), w1_ref[...], preferred_element_type=jnp.float32)
        + b1_ref[...]
    )                                        # (BT, 128): actor h1 | critic h1
    h2 = jnp.tanh(
        jnp.dot(h1.astype(wdt), w2_ref[...], preferred_element_type=jnp.float32)
        + b2_ref[...]
    )                                        # (BT, 64): actor h2 | critic h2 (all live)
    z3 = (jnp.dot(h2.astype(wdt), w3_ref[...], preferred_element_type=jnp.float32)
          + b3_ref[...])                     # (BT, 128)

    action_mean = jnp.tanh(z3[:, :A])        # (BT, A)  actor output (tanh'd)
    state_value = z3[:, A:A + 1]             # (BT, 1)  critic output (no tanh)

    # ---- diag-Gaussian log_prob (constants precomputed in wrapper) ----
    gauss = gauss_ref[...]                   # (1, 128)
    inv_var = gauss[:, :A]                   # (1, A)
    log_const = gauss[:, A:A + 1]            # (1, 1) = k*log(2*pi) + sum(log(var))

    diff = a - action_mean                   # (BT, A)
    quad = jnp.sum(diff * diff * inv_var, axis=-1, keepdims=True)    # (BT, 1)
    logprob = -0.5 * (quad + log_const)                              # (BT, 1)

    # ---- dense narrow output: contiguous 8 B/row writeback ----
    out_ref[...] = jnp.concatenate([logprob, state_value], axis=-1)  # (BT, 2)


# -------------------------- param packing --------------------------

def _round_up(x, m):
    return ((x + m - 1) // m) * m


def pack_params(params, action_var, state_dim, action_dim, *, weight_dtype=jnp.float32):
    """Fuse actor + critic Linear layers into MXU-friendly matrices.

    Layer 1: (S, 128)   cols 0:64 actor, 64:128 critic
    Layer 2: (128, 64)  cols 0:32 actor, 32:64 critic   (only live lanes kept)
    Layer 3: (64, 128)  cols 0:A actor mean, col A critic value
    """
    H1, H2, W = 64, 32, 128
    A = action_dim
    assert A + 1 <= W, "action_dim too large for the packed 128-lane layout"
    assert 2 * H1 <= W and 2 * H2 <= W

    w1 = (jnp.zeros((state_dim, W), jnp.float32)
          .at[:, :H1].set(params["wa1"])
          .at[:, H1:2 * H1].set(params["wc1"]))
    b1 = (jnp.zeros((1, W), jnp.float32)
          .at[:, :H1].set(params["ba1"])
          .at[:, H1:2 * H1].set(params["bc1"]))

    w2 = (jnp.zeros((W, 2 * H2), jnp.float32)
          .at[:H1, :H2].set(params["wa2"])
          .at[H1:2 * H1, H2:2 * H2].set(params["wc2"]))
    b2 = (jnp.zeros((1, 2 * H2), jnp.float32)
          .at[:, :H2].set(params["ba2"])
          .at[:, H2:2 * H2].set(params["bc2"]))

    w3 = (jnp.zeros((2 * H2, W), jnp.float32)
          .at[:H2, :A].set(params["wa3"])
          .at[H2:2 * H2, A:A + 1].set(params["wc3"]))
    b3 = (jnp.zeros((1, W), jnp.float32)
          .at[:, :A].set(params["ba3"])
          .at[:, A:A + 1].set(params["bc3"]))

    # action_var must be strictly positive (same implicit assumption as PyTorch).
    inv_var = 1.0 / action_var                               # (A,)
    logdet = jnp.sum(jnp.log(action_var))
    log_const = A * math.log(2.0 * math.pi) + logdet
    gauss = (jnp.zeros((1, W), jnp.float32)
             .at[0, :A].set(inv_var)
             .at[0, A].set(log_const))

    w1 = w1.astype(weight_dtype)
    w2 = w2.astype(weight_dtype)
    w3 = w3.astype(weight_dtype)
    return w1, b1, w2, b2, w3, b3, gauss


# -------------------------- wrapper --------------------------

@functools.partial(jax.jit, static_argnames=("block_b", "use_bf16_matmul"))
def actor_critic_evaluate(state, action, params, action_var, *,
                          block_b=2048, use_bf16_matmul=False):
    """Pallas-backed equivalent of ActorCritic.evaluate(state, action).

    Returns (action_logprobs (B,), state_value (B,), dist_entropy (B,)).

    block_b: batch rows per grid step (rounded to a multiple of 128). 2048 keeps
    the kernel compute-bound vs. the ~0.35 us/step pipeline overhead while staying
    well under v7x's 32 MiB scoped VMEM; v5e/v6e (128 MiB parts) can push 4096-8192.
    use_bf16_matmul: cast MXU operands to bf16 (f32 accumulate); relaxes the
    reference tolerance to ~1e-3 but is ~3x fewer MXU passes (biggest win on v5e).
    """
    B, S = state.shape
    A = action.shape[-1]

    weight_dtype = jnp.bfloat16 if use_bf16_matmul else jnp.float32
    w1, b1, w2, b2, w3, b3, gauss = pack_params(
        params, action_var, S, A, weight_dtype=weight_dtype)

    # --- batch tiling: tile is a multiple of 128 (or the whole padded batch) ---
    bt = min(_round_up(block_b, 128), _round_up(B, 8))
    b_pad = _round_up(max(B, 8), bt)
    if b_pad != B:
        state = jnp.pad(state, ((0, b_pad - B), (0, 0)))
        action = jnp.pad(action, ((0, b_pad - B), (0, 0)))

    grid = (b_pad // bt,)

    stream = lambda shape: pl.BlockSpec(shape, lambda i: (i, 0))    # batch-tiled
    resident = lambda shape: pl.BlockSpec(shape, lambda i: (0, 0))  # VMEM-resident

    out = pl.pallas_call(
        _actor_critic_eval_kernel,
        out_shape=jax.ShapeDtypeStruct((b_pad, 2), jnp.float32),
        grid_spec=pltpu.PrefetchScalarGridSpec(
            num_scalar_prefetch=0,
            grid=grid,
            in_specs=[
                stream((bt, S)),
                stream((bt, A)),
                resident((S, 128)), resident((1, 128)),
                resident((128, 64)), resident((1, 64)),
                resident((64, 128)), resident((1, 128)),
                resident((1, 128)),
            ],
            out_specs=stream((bt, 2)),
        ),
        compiler_params=pltpu.CompilerParams(
            dimension_semantics=("parallel",),
            vmem_limit_bytes=32 * 1024 * 1024,   # explicit: v5e default is 16 MiB; safe on v7x
        ),
    )(state, action, w1, b1, w2, b2, w3, b3, gauss)

    logprob = out[:B, 0]
    value = out[:B, 1]

    # entropy depends only on action_var (batch-independent): compute in the wrapper.
    log2pi = math.log(2.0 * math.pi)
    entropy = 0.5 * A * (1.0 + log2pi) + 0.5 * jnp.sum(jnp.log(action_var))
    entropy = jnp.broadcast_to(entropy, (B,))

    return logprob, value, entropy


# -------------------------- deterministic param init --------------------------

def init_params(key, state_dim, action_dim):
    """PyTorch-style Linear init: U(-1/sqrt(fan_in), 1/sqrt(fan_in)).
    Weights stored as (in_features, out_features)."""
    def linear(k, fan_in, fan_out):
        kw, kb = jax.random.split(k)
        bound = 1.0 / math.sqrt(fan_in)
        w = jax.random.uniform(kw, (fan_in, fan_out), jnp.float32, -bound, bound)
        b = jax.random.uniform(kb, (1, fan_out), jnp.float32, -bound, bound)
        return w, b

    ks = jax.random.split(key, 6)
    wa1, ba1 = linear(ks[0], state_dim, 64)
    wa2, ba2 = linear(ks[1], 64, 32)
    wa3, ba3 = linear(ks[2], 32, action_dim)
    wc1, bc1 = linear(ks[3], state_dim, 64)
    wc2, bc2 = linear(ks[4], 64, 32)
    wc3, bc3 = linear(ks[5], 32, 1)
    return dict(
        wa1=wa1, ba1=ba1, wa2=wa2, ba2=ba2, wa3=wa3, ba3=ba3,
        wc1=wc1, bc1=bc1, wc2=wc2, bc2=bc2, wc3=wc3, bc3=bc3,
    )


# -------------------------- pure-JAX reference --------------------------

def reference_evaluate(state, action, params, action_var):
    def mlp(x, w1, b1, w2, b2, w3, b3, last_tanh):
        h = jnp.tanh(x @ w1 + b1)
        h = jnp.tanh(h @ w2 + b2)
        o = h @ w3 + b3
        return jnp.tanh(o) if last_tanh else o

    mean = mlp(state, params["wa1"], params["ba1"], params["wa2"], params["ba2"],
               params["wa3"], params["ba3"], True)
    value = mlp(state, params["wc1"], params["bc1"], params["wc2"], params["bc2"],
                params["wc3"], params["bc3"], False)
    var = action_var[None, :]
    k = var.shape[-1]
    log2pi = math.log(2.0 * math.pi)
    diff = action - mean
    logprob = -0.5 * (jnp.sum(diff * diff / var, axis=-1)
                      + k * log2pi + jnp.sum(jnp.log(var), axis=-1))
    entropy = 0.5 * k * (1.0 + log2pi) + 0.5 * jnp.sum(jnp.log(var), axis=-1)
    return logprob, value[:, 0], jnp.broadcast_to(entropy, logprob.shape)


# -------------------------- main --------------------------

if __name__ == "__main__":
    B, state_dim, action_dim = 8, 12, 2
    action_std = 0.5

    key = jax.random.PRNGKey(0)
    k_params, k_state, k_action = jax.random.split(key, 3)

    params = init_params(k_params, state_dim, action_dim)
    action_var = jnp.full((action_dim,), action_std * action_std, dtype=jnp.float32)

    state = jax.random.normal(k_state, (B, state_dim), dtype=jnp.float32)
    action = jax.random.normal(k_action, (B, action_dim), dtype=jnp.float32)

    logprob, value, entropy = actor_critic_evaluate(state, action, params, action_var)
    jax.block_until_ready((logprob, value, entropy))

    ref_lp, ref_v, ref_ent = reference_evaluate(state, action, params, action_var)
    assert jnp.allclose(logprob, ref_lp, atol=1e-5), "logprob mismatch"
    assert jnp.allclose(value, ref_v, atol=1e-5), "value mismatch"
    assert jnp.allclose(entropy, ref_ent, atol=1e-5), "entropy mismatch"

    print("KERNEL_OK")
</pallas_src>

<mosaic_0001>
module attributes {stable_mosaic.version = 11 : i64} {
  func.func @_actor_critic_eval_kernel(%arg0: i32, %arg1: memref<8x12xf32, #tpu.memory_space<vmem>>, %arg2: memref<8x2xf32, #tpu.memory_space<vmem>>, %arg3: memref<12x128xf32, #tpu.memory_space<vmem>>, %arg4: memref<1x128xf32, #tpu.memory_space<vmem>>, %arg5: memref<128x64xf32, #tpu.memory_space<vmem>>, %arg6: memref<1x64xf32, #tpu.memory_space<vmem>>, %arg7: memref<64x128xf32, #tpu.memory_space<vmem>>, %arg8: memref<1x128xf32, #tpu.memory_space<vmem>>, %arg9: memref<1x128xf32, #tpu.memory_space<vmem>>, %arg10: memref<8x2xf32, #tpu.memory_space<vmem>>) attributes {dimension_semantics = [#tpu.dimension_semantics<parallel>], iteration_bounds = array<i64: 1>, scalar_prefetch = 0 : i64, scratch_operands = 0 : i64, tpu.core_type = #tpu.core_type<tc>, window_params = [{transform_indices = @transform_0, window_bounds = array<i64: 8, 12>}, {transform_indices = @transform_1, window_bounds = array<i64: 8, 2>}, {pipeline_mode = #tpu.pipeline_mode<synchronous>, transform_indices = @transform_2, window_bounds = array<i64: 12, 128>}, {pipeline_mode = #tpu.pipeline_mode<synchronous>, transform_indices = @transform_3, window_bounds = array<i64: 1, 128>}, {pipeline_mode = #tpu.pipeline_mode<synchronous>, transform_indices = @transform_4, window_bounds = array<i64: 128, 64>}, {pipeline_mode = #tpu.pipeline_mode<synchronous>, transform_indices = @transform_5, window_bounds = array<i64: 1, 64>}, {pipeline_mode = #tpu.pipeline_mode<synchronous>, transform_indices = @transform_6, window_bounds = array<i64: 64, 128>}, {pipeline_mode = #tpu.pipeline_mode<synchronous>, transform_indices = @transform_7, window_bounds = array<i64: 1, 128>}, {pipeline_mode = #tpu.pipeline_mode<synchronous>, transform_indices = @transform_8, window_bounds = array<i64: 1, 128>}, {transform_indices = @transform_9, window_bounds = array<i64: 8, 2>}]} {
    %c0 = arith.constant 0 : index
    %c0_0 = arith.constant 0 : index
    %0 = vector.load %arg1[%c0, %c0_0] : memref<8x12xf32, #tpu.memory_space<vmem>>, vector<8x12xf32>
    %c0_1 = arith.constant 0 : index
    %c0_2 = arith.constant 0 : index
    %1 = vector.load %arg2[%c0_1, %c0_2] : memref<8x2xf32, #tpu.memory_space<vmem>>, vector<8x2xf32>
    %c0_3 = arith.constant 0 : index
    %c0_4 = arith.constant 0 : index
    %2 = vector.load %arg3[%c0_3, %c0_4] : memref<12x128xf32, #tpu.memory_space<vmem>>, vector<12x128xf32>
    %cst = arith.constant dense<0.000000e+00> : vector<8x128xf32>
    %3 = tpu.matmul %0, %2, %cst {dimension_numbers = #tpu.dot_dimension_numbers<[1], [0], [0], [1], [0, 0, 1, 1], [], []>} : vector<8x12xf32>, vector<12x128xf32>, vector<8x128xf32> -> vector<8x128xf32>
    %c0_5 = arith.constant 0 : index
    %c0_6 = arith.constant 0 : index
    %4 = vector.load %arg4[%c0_5, %c0_6] : memref<1x128xf32, #tpu.memory_space<vmem>>, vector<1x128xf32>
    %5 = vector.broadcast %4 : vector<1x128xf32> to vector<8x128xf32>
    %6 = arith.addf %3, %5 : vector<8x128xf32>
    %7 = math.tanh %6 : vector<8x128xf32>
    %c0_7 = arith.constant 0 : index
    %c0_8 = arith.constant 0 : index
    %8 = vector.load %arg5[%c0_7, %c0_8] : memref<128x64xf32, #tpu.memory_space<vmem>>, vector<128x64xf32>
    %cst_9 = arith.constant dense<0.000000e+00> : vector<8x64xf32>
    %9 = tpu.matmul %7, %8, %cst_9 {dimension_numbers = #tpu.dot_dimension_numbers<[1], [0], [0], [1], [0, 0, 1, 1], [], []>} : vector<8x128xf32>, vector<128x64xf32>, vector<8x64xf32> -> vector<8x64xf32>
    %c0_10 = arith.constant 0 : index
    %c0_11 = arith.constant 0 : index
    %10 = vector.load %arg6[%c0_10, %c0_11] : memref<1x64xf32, #tpu.memory_space<vmem>>, vector<1x64xf32>
    %11 = vector.broadcast %10 : vector<1x64xf32> to vector<8x64xf32>
    %12 = arith.addf %9, %11 : vector<8x64xf32>
    %13 = math.tanh %12 : vector<8x64xf32>
    %c0_12 = arith.constant 0 : index
    %c0_13 = arith.constant 0 : index
    %14 = vector.load %arg7[%c0_12, %c0_13] : memref<64x128xf32, #tpu.memory_space<vmem>>, vector<64x128xf32>
    %cst_14 = arith.constant dense<0.000000e+00> : vector<8x128xf32>
    %15 = tpu.matmul %13, %14, %cst_14 {dimension_numbers = #tpu.dot_dimension_numbers<[1], [0], [0], [1], [0, 0, 1, 1], [], []>} : vector<8x64xf32>, vector<64x128xf32>, vector<8x128xf32> -> vector<8x128xf32>
    %c0_15 = arith.constant 0 : index
    %c0_16 = arith.constant 0 : index
    %16 = vector.load %arg8[%c0_15, %c0_16] : memref<1x128xf32, #tpu.memory_space<vmem>>, vector<1x128xf32>
    %17 = vector.broadcast %16 : vector<1x128xf32> to vector<8x128xf32>
    %18 = arith.addf %15, %17 : vector<8x128xf32>
    %19 = vector.extract_strided_slice %18 {offsets = [0, 0], sizes = [8, 2], strides = [1, 1]} : vector<8x128xf32> to vector<8x2xf32>
    %20 = math.tanh %19 : vector<8x2xf32>
    %21 = vector.extract_strided_slice %18 {offsets = [0, 2], sizes = [8, 1], strides = [1, 1]} : vector<8x128xf32> to vector<8x1xf32>
    %c0_17 = arith.constant 0 : index
    %c0_18 = arith.constant 0 : index
    %22 = vector.load %arg9[%c0_17, %c0_18] : memref<1x128xf32, #tpu.memory_space<vmem>>, vector<1x128xf32>
    %23 = vector.extract_strided_slice %22 {offsets = [0, 0], sizes = [1, 2], strides = [1, 1]} : vector<1x128xf32> to vector<1x2xf32>
    %24 = vector.extract_strided_slice %22 {offsets = [0, 2], sizes = [1, 1], strides = [1, 1]} : vector<1x128xf32> to vector<1x1xf32>
    %25 = arith.subf %1, %20 : vector<8x2xf32>
    %26 = arith.mulf %25, %25 : vector<8x2xf32>
    %27 = vector.broadcast %23 : vector<1x2xf32> to vector<8x2xf32>
    %28 = arith.mulf %26, %27 : vector<8x2xf32>
    %cst_19 = arith.constant dense<0.000000e+00> : vector<8xf32>
    %29 = vector.multi_reduction <add>, %28, %cst_19 [1] : vector<8x2xf32> to vector<8xf32>
    %30 = vector.shape_cast %29 : vector<8xf32> to vector<8x1xf32>
    %31 = vector.broadcast %24 : vector<1x1xf32> to vector<8x1xf32>
    %32 = arith.addf %30, %31 : vector<8x1xf32>
    %cst_20 = arith.constant -5.000000e-01 : f32
    %33 = vector.broadcast %cst_20 : f32 to vector<8x1xf32>
    %34 = arith.mulf %33, %32 : vector<8x1xf32>
    %35 = tpu.concatenate %34, %21 in 1 : vector<8x1xf32>, vector<8x1xf32> -> vector<8x2xf32>
    %c0_21 = arith.constant 0 : index
    %c0_22 = arith.constant 0 : index
    %36 = vector.load %arg10[%c0_21, %c0_22] : memref<8x2xf32, #tpu.memory_space<vmem>>, vector<8x2xf32>
    tpu.vector_store %arg10[%c0_21, %c0_22], %35 {strides = array<i32>} : memref<8x2xf32, #tpu.memory_space<vmem>>, vector<8x2xf32>,
    return
  }
  func.func @transform_0(%arg0: i32) -> (i32, i32) {
    %c0_i32 = arith.constant 0 : i32
    %c0_i32_0 = arith.constant 0 : i32
    return %arg0, %c0_i32 : i32, i32
  }
  func.func @transform_1(%arg0: i32) -> (i32, i32) {
    %c0_i32 = arith.constant 0 : i32
    %c0_i32_0 = arith.constant 0 : i32
    return %arg0, %c0_i32 : i32, i32
  }
  func.func @transform_2(%arg0: i32) -> (i32, i32) {
    %c0_i32 = arith.constant 0 : i32
    %c0_i32_0 = arith.constant 0 : i32
    %c0_i32_1 = arith.constant 0 : i32
    return %c0_i32, %c0_i32_0 : i32, i32
  }
  func.func @transform_3(%arg0: i32) -> (i32, i32) {
    %c0_i32 = arith.constant 0 : i32
    %c0_i32_0 = arith.constant 0 : i32
    %c0_i32_1 = arith.constant 0 : i32
    return %c0_i32, %c0_i32_0 : i32, i32
  }
  func.func @transform_4(%arg0: i32) -> (i32, i32) {
    %c0_i32 = arith.constant 0 : i32
    %c0_i32_0 = arith.constant 0 : i32
    %c0_i32_1 = arith.constant 0 : i32
    return %c0_i32, %c0_i32_0 : i32, i32
  }
  func.func @transform_5(%arg0: i32) -> (i32, i32) {
    %c0_i32 = arith.constant 0 : i32
    %c0_i32_0 = arith.constant 0 : i32
    %c0_i32_1 = arith.constant 0 : i32
    return %c0_i32, %c0_i32_0 : i32, i32
  }
  func.func @transform_6(%arg0: i32) -> (i32, i32) {
    %c0_i32 = arith.constant 0 : i32
    %c0_i32_0 = arith.constant 0 : i32
    %c0_i32_1 = arith.constant 0 : i32
    return %c0_i32, %c0_i32_0 : i32, i32
  }
  func.func @transform_7(%arg0: i32) -> (i32, i32) {
    %c0_i32 = arith.constant 0 : i32
    %c0_i32_0 = arith.constant 0 : i32
    %c0_i32_1 = arith.constant 0 : i32
    return %c0_i32, %c0_i32_0 : i32, i32
  }
  func.func @transform_8(%arg0: i32) -> (i32, i32) {
    %c0_i32 = arith.constant 0 : i32
    %c0_i32_0 = arith.constant 0 : i32
    %c0_i32_1 = arith.constant 0 : i32
    return %c0_i32, %c0_i32_0 : i32, i32
  }
  func.func @transform_9(%arg0: i32) -> (i32, i32) {
    %c0_i32 = arith.constant 0 : i32
    %c0_i32_0 = arith.constant 0 : i32
    return %arg0, %c0_i32 : i32, i32
  }
}

</mosaic_0001>

<bundles_post_ra>
// kernel: actor_critic_evaluate.1
= control target key start
LH: loop header
LB: loop body
LE: loop exit
PB: predicated region body
PF: predicated region fallthrough
CT: control target
= control target key end

     0   :  { %vm44_vm0 = vcmask 1043456   ;;  %vm40_vm1 = vcmask 97280   ;;  %vm122_vm2 = vcmask 523264   ;;  %vm154_vm3 = vcmask 15360   ;;  %s341_s2 = inlined_call_operand.vmem [shape: f32[12,128], index: 2, kind: input, shape index: {}]   ;;  %s342_s0 = inlined_call_operand.vmem [shape: f32[8,12], index: 0, kind: input, shape index: {}]   ;;  %s343_s4 = inlined_call_operand.vmem [shape: f32[128,64], index: 4, kind: input, shape index: {}]   ;;  %s344_s3 = inlined_call_operand.vmem [shape: f32[1,128], index: 3, kind: input, shape index: {}]   ;;  %s345_s5 = inlined_call_operand.vmem [shape: f32[1,64], index: 5, kind: input, shape index: {}]   ;;  %s346_s6 = inlined_call_operand.vmem [shape: f32[64,128], index: 6, kind: input, shape index: {}]   ;;  %s347_s7 = inlined_call_operand.vmem [shape: f32[1,128], index: 7, kind: input, shape index: {}]   ;;  %s348_s8 = inlined_call_operand.vmem [shape: f32[1,128], index: 8, kind: input, shape index: {}]   ;;  %s349_s1 = inlined_call_operand.vmem [shape: f32[8,2], index: 1, kind: input, shape index: {}]   ;;  %s350_s9 = inlined_call_operand.vmem [shape: f32[8,2], index: 9, kind: output, shape index: {}]  }
   0x1   :  { %v35_v0 = vld [vmem:[%s341_s2 + $0x8] sm:$0xf]  ;;  %v34_v1 = vld [vmem:[%s341_s2] sm:$0xff]  ;;  %v84_v3 = vld [vmem:[%s343_s4 + $0x78] sm:$0xff]  ;;  %vm168_vm4 = vcmask 7168  }
   0x2   :  { %175 = vmatpush.msk.msra.mxu0 %vm44_vm0, %v35_v0  ;;  %v32_v2 = vld [vmem:[%s342_s0] sm:$0xff]  ;;  %v83_v4 = vld [vmem:[%s343_s4 + $0x70] sm:$0xff]  ;;  %89 = vmatpush.msra.mxu1 %v84_v3  ;;  %v82_v5 = vld [vmem:[%s343_s4 + $0x68] sm:$0xff] }
   0x3   :  { %v81_v6 = vld [vmem:[%s343_s4 + $0x60] sm:$0xff]  ;;  %v80_v7 = vld [vmem:[%s343_s4 + $0x58] sm:$0xff]  ;;  %v79_v8 = vld [vmem:[%s343_s4 + $0x50] sm:$0xff] }
   0x4   :  { %63 = vmatpush.msra.mxu0 %v34_v1  ;;  %90 = vmatpush.msra.mxu1 %v83_v4  ;;  %v78_v9 = vld [vmem:[%s343_s4 + $0x48] sm:$0xff]  ;;  %v77_v10 = vld [vmem:[%s343_s4 + $0x40] sm:$0xff]  ;;  %v76_v11 = vld [vmem:[%s343_s4 + $0x38] sm:$0xff] }
   0x5   :  { %176 = vmatmul.msk.f32.vlgmr.msra.gmra.mxu0 %vm40_vm1, %v32_v2  ;;  %v75_v12 = vld [vmem:[%s343_s4 + $0x30] sm:$0xff]  ;;  %v74_v13 = vld [vmem:[%s343_s4 + $0x28] sm:$0xff]  ;;  %v73_v14 = vld [vmem:[%s343_s4 + $0x20] sm:$0xff] }
   0x6   :  { %91 = vmatpush.msra.mxu1 %v82_v5  ;;  %v72_v15 = vld [vmem:[%s343_s4 + $0x18] sm:$0xff]  ;;  %v71_v16 = vld [vmem:[%s343_s4 + $0x10] sm:$0xff]  ;;  %v70_v17 = vld [vmem:[%s343_s4 + $0x8] sm:$0xff] }
   0x7   :  { %v69_v18 = vld [vmem:[%s343_s4] sm:$0xff]  ;;  %v117_v19 = vld [vmem:[%s346_s6 + $0x38] sm:$0xff]  ;;  %v116_v20 = vld [vmem:[%s346_s6 + $0x30] sm:$0xff] }
   0x8   :  { %92 = vmatpush.msra.mxu1 %v81_v6  ;;  %134 = vmatpush.msra.mxu2 %v117_v19  ;;  %v115_v21 = vld [vmem:[%s346_s6 + $0x28] sm:$0xff]  ;;  %v180_v22 = vld [vmem:[%s344_s3] ss:$0 sm:$0xff]  ;;  %v113_v27 = vld [vmem:[%s346_s6 + $0x18] sm:$0xff] }
   0x9   :  { %v114_v26 = vld [vmem:[%s346_s6 + $0x20] sm:$0xff]  ;;  %v112_v28 = vld [vmem:[%s346_s6 + $0x10] sm:$0xff]  ;;  %v111_v29 = vld [vmem:[%s346_s6 + $0x8] sm:$0xff] }
   0xa   :  { %93 = vmatpush.msra.mxu1 %v80_v7  ;;  %135 = vmatpush.msra.mxu2 %v116_v20  ;;  %v110_v30 = vld [vmem:[%s346_s6] sm:$0xff]  ;;  %s190_s6 = smov 127  }
   0xb   :  { %v181_v31 = vld [vmem:[%s345_s5] ss:$0 sm:$0xff] }
   0xc   :  { %94 = vmatpush.msra.mxu1 %v79_v8  ;;  %136 = vmatpush.msra.mxu2 %v115_v21  ;;  %v182_v35 = vld [vmem:[%s347_s7] ss:$0 sm:$0xff]  ;;  %s191_s7 = smov 126  }
   0xd   :  { %v33_v38 = vld [vmem:[%s349_s1] sm:$0xff] }
   0xe   :  { %95 = vmatpush.msra.mxu1 %v78_v9  ;;  %137 = vmatpush.msra.mxu2 %v114_v26  ;;  %v183_v41 = vld [vmem:[%s348_s8] ss:$0 sm:$0xff] }
  0x10   :  { %96 = vmatpush.msra.mxu1 %v77_v10  ;;  %138 = vmatpush.msra.mxu2 %v113_v27 }
  0x12   :  { %97 = vmatpush.msra.mxu1 %v76_v11  ;;  %139 = vmatpush.msra.mxu2 %v112_v28 }
  0x14   :  { %98 = vmatpush.msra.mxu1 %v75_v12  ;;  %140 = vmatpush.msra.mxu2 %v111_v29 }
  0x16   :  { %99 = vmatpush.msra.mxu1 %v74_v13  ;;  %141 = vmatpush.msra.mxu2 %v110_v30 }
  0x18   :  { %100 = vmatpush.msra.mxu1 %v73_v14 }
  0x1a   :  { %101 = vmatpush.msra.mxu1 %v72_v15 }
  0x1c   :  { %102 = vmatpush.msra.mxu1 %v71_v16 }
  0x1e   :  { %103 = vmatpush.msra.mxu1 %v70_v17 }
  0x20   :  { %104 = vmatpush.msra.mxu1 %v69_v18 }
  0x82   :  { %v65_v23 = vpop.f32.mrf.mxu0 }
  0x83   :  { %v66_v24 = vadd.f32 %v180_v22, %v65_v23 }
  0x85   :  { %184 = vtanh.f32 %v66_v24 }
  0x8b   :  { %v185_v25 = vpop.eup %184 }
  0x8c   :  { %105 = vmatmul.f32.vlgmr.msra.gmra.mxu1 %v185_v25 }
 0x109   :  { %v106_v32 = vpop.f32.mrf.mxu1 }
 0x10a   :  { %v107_v33 = vadd.f32 %v181_v31, %v106_v32 }
 0x10c   :  { %186 = vtanh.f32 %v107_v33 }
 0x112   :  { %v187_v34 = vpop.eup %186 }
 0x113   :  { %177 = vmatmul.msk.f32.vlgmr.msra.gmra.mxu2 %vm122_vm2, %v187_v34 }
 0x196   :  { %v143_v36 = vpop.f32.mrf.mxu2 }
 0x197   :  { %v144_v37 = vadd.f32 %v182_v35, %v143_v36 }
 0x199   :  { %188 = vtanh.f32 %v144_v37  ;;  %165 = vrot.lane.b32.xlu1 %v144_v37, %s190_s6 }
 0x19f   :  { %v189_v39 = vpop.eup %188 }
 0x1a0   :  { %v148_v40 = vsub.f32 %v33_v38, %v189_v39 }
 0x1a2   :  { %v149_v42 = vmul.f32 %v148_v40, %v148_v40 }
 0x1a4   :  { %v153_v43 = vmul.f32 %v183_v41, %v149_v42 }
 0x1a6   :  { %v155_v44 = vsel %vm154_vm3, %v153_v43, 0.0 }
 0x1a7   :  { %156 = vadd.xlane.f32.xlu0 %v155_v44 }
 0x20b   :  { %v166_v48 = vpop.permute.xlu1 %165 }
 0x21a   :  { %v157_v45 = vpop.xlane.xlu0 %156 }
 0x21b   :  { %v158_v46 = vadd.f32 %v183_v41, %v157_v45 }
 0x21d   :  { %v159_v47 = vmul.f32 -0.5, %v158_v46 }
 0x21f   :  { %161 = vrot.lane.b32.xlu0 %v159_v47, %s191_s7 }
 0x291   :  { %v162_v49 = vpop.permute.xlu0 %161 }
 0x292   :  { %v169_v50 = vsel %vm168_vm4, %v162_v49, %v166_v48 }
 0x293   :  { %170 = vst.msk [vmem:[%s350_s9] sm:$0xff] %vm154_vm3, %v169_v50 }

</bundles_post_ra>
